<compile_context>
chip_gen: v7x
topology: tpu7x:2x2x1
jax: 0.10.0
libtpu: 0.0.40
codegen_flags: <defaults>
</compile_context>

<pallas_src>
import functools

import jax
import jax.numpy as jnp
from jax.experimental import pallas as pl
from jax.experimental.pallas import tpu as pltpu

HIDDEN1 = 256
HIDDEN2 = 128
_LANE = 128
_SUBLANE = 8


def _round_up(x, m):
    return ((x + m - 1) // m) * m


def _actor_kernel(obs_ref,
                  w1_ref, b1_ref,
                  w3_ref, b3_ref,
                  w4_ref, b4_ref,
                  w5_ref, b5_ref,
                  w2_ref, b2_ref,
                  out_ref,
                  *, matmul_dtype, approx_recip):
    # MXU matmuls (bf16 inputs on the fast path, f32 accumulation); tanh/exp and
    # the bias adds stay f32 on the VPU/EUP (portable to v5e which lacks bf16
    # VALU/EUP).
    def dense(x, w_ref, b_ref):
        return (jnp.dot(x.astype(matmul_dtype), w_ref[...],
                        preferred_element_type=jnp.float32)
                + b_ref[...])

    h = jnp.tanh(dense(obs_ref[...], w1_ref, b1_ref))
    h = jnp.tanh(dense(h, w3_ref, b3_ref))
    h = jnp.tanh(dense(h, w4_ref, b4_ref))
    h = jnp.tanh(dense(h, w5_ref, b5_ref))
    logits = dense(h, w2_ref, b2_ref)

    # Softmax over the action axis.  Padded lanes carry bias -1e30 so
    # exp(pad - m) == 0 and real-lane probabilities are exact.
    m = jnp.max(logits, axis=-1, keepdims=True)
    e = jnp.exp(logits - m)
    denom = jnp.sum(e, axis=-1, keepdims=True)
    out_ref[...] = (e * pl.reciprocal(denom, approx=approx_recip)).astype(out_ref.dtype)


def _resident_spec(arr):
    # Full-array block with a constant index_map: the operand is DMA'd once and
    # stays resident in VMEM across every grid step.
    ndim = arr.ndim
    return pl.BlockSpec(arr.shape, lambda i, _n=ndim: (0,) * _n,
                        memory_space=pltpu.VMEM)


@functools.partial(jax.jit, static_argnames=("block_batch", "matmul_dtype"))
def actor_forward(obs, params, *, block_batch=1024, matmul_dtype=jnp.bfloat16):
    """obs: (B, obs_size) f32.  params: dict of (in,out) weights and (1,out) biases.

    matmul_dtype=jnp.bfloat16 (default): fast MXU path, ~1e-2 accuracy.
    matmul_dtype=jnp.float32: exact path (matches the PyTorch forward to ~1e-5).
    """
    batch, obs_size = obs.shape
    action_size = params["w2"].shape[1]
    assert block_batch % _SUBLANE == 0

    fast = matmul_dtype != jnp.float32

    # Batch tiling: a single tile when it fits, otherwise an even number of
    # near-equal tiles (balanced across v7x's two TensorCores).
    if batch <= block_batch:
        tb = _round_up(batch, _SUBLANE)
        n_tiles = 1
    else:
        n_tiles = _round_up(pl.cdiv(batch, block_batch), 2)
        tb = _round_up(pl.cdiv(batch, n_tiles), _SUBLANE)
    b_pad = tb * n_tiles

    # Lane-dense output store: pad action features up to a multiple of 128.
    a_pad = _round_up(action_size, _LANE)

    obs_p = obs if b_pad == batch else jnp.pad(obs, ((0, b_pad - batch), (0, 0)))

    w2, b2 = params["w2"], params["b2"]
    if a_pad != action_size:
        w2 = jnp.pad(w2, ((0, 0), (0, a_pad - action_size)))
        b2 = jnp.pad(b2, ((0, 0), (0, a_pad - action_size)),
                     constant_values=jnp.float32(-1e30))

    def wcast(w):
        return w.astype(matmul_dtype)

    weight_args = (
        wcast(params["w1"]), params["b1"],
        wcast(params["w3"]), params["b3"],
        wcast(params["w4"]), params["b4"],
        wcast(params["w5"]), params["b5"],
        wcast(w2), b2,
    )

    obs_spec = pl.BlockSpec((tb, obs_size), lambda i: (i, 0),
                            memory_space=pltpu.VMEM)
    out_spec = pl.BlockSpec((tb, a_pad), lambda i: (i, 0),
                            memory_space=pltpu.VMEM)
    in_specs = [obs_spec] + [_resident_spec(a) for a in weight_args]

    # Advisory cost so XLA can overlap surrounding ops in larger jitted graphs.
    wbytes = sum(int(a.size) * a.dtype.itemsize for a in weight_args)
    flops = 2 * b_pad * (obs_size * HIDDEN1 + HIDDEN1 * HIDDEN1
                         + HIDDEN1 * HIDDEN2 + HIDDEN2 * HIDDEN2
                         + HIDDEN2 * a_pad)
    transcend = b_pad * (2 * HIDDEN1 + 2 * HIDDEN2 + a_pad + 1)  # tanh + exp + recip
    bytes_acc = b_pad * obs_size * 4 + b_pad * a_pad * 4 + wbytes

    kernel = functools.partial(_actor_kernel,
                               matmul_dtype=matmul_dtype,
                               approx_recip=fast)

    out_padded = pl.pallas_call(
        kernel,
        out_shape=jax.ShapeDtypeStruct((b_pad, a_pad), jnp.float32),
        grid=(n_tiles,),
        in_specs=in_specs,
        out_specs=out_spec,
        compiler_params=pltpu.CompilerParams(
            dimension_semantics=("parallel",)),
        cost_estimate=pl.CostEstimate(flops=flops,
                                      transcendentals=transcend,
                                      bytes_accessed=bytes_acc),
    )(obs_p, *weight_args)

    if b_pad == batch and a_pad == action_size:
        return out_padded
    return out_padded[:batch, :action_size]


def init_actor_params(key, obs_size, action_size):
    """Deterministic init matching nn.Linear's U(-1/sqrt(fan_in), 1/sqrt(fan_in)).

    Weights are stored transposed relative to PyTorch: (in_features, out_features).
    Biases are stored as (1, out_features) so they stay 2-D inside the kernel.
    """
    dims = [
        ("w1", "b1", obs_size, HIDDEN1),
        ("w3", "b3", HIDDEN1, HIDDEN1),
        ("w4", "b4", HIDDEN1, HIDDEN2),
        ("w5", "b5", HIDDEN2, HIDDEN2),
        ("w2", "b2", HIDDEN2, action_size),
    ]
    params = {}
    keys = jax.random.split(key, 2 * len(dims))
    for i, (wn, bn, fan_in, fan_out) in enumerate(dims):
        bound = 1.0 / (fan_in ** 0.5)
        params[wn] = jax.random.uniform(
            keys[2 * i], (fan_in, fan_out), jnp.float32, -bound, bound)
        params[bn] = jax.random.uniform(
            keys[2 * i + 1], (1, fan_out), jnp.float32, -bound, bound)
    return params


def _reference_forward(obs, params):
    h = jnp.tanh(obs @ params["w1"] + params["b1"])
    h = jnp.tanh(h @ params["w3"] + params["b3"])
    h = jnp.tanh(h @ params["w4"] + params["b4"])
    h = jnp.tanh(h @ params["w5"] + params["b5"])
    logits = h @ params["w2"] + params["b2"]
    return jax.nn.softmax(logits, axis=1)


if __name__ == "__main__":
    obs_size = 32
    action_size = 8

    key = jax.random.PRNGKey(0)
    k_params, k1, k2, k3 = jax.random.split(key, 4)
    params = init_actor_params(k_params, obs_size, action_size)

    # (1) Exact f32 path, single small tile: tight-tolerance check vs pure-JAX ref.
    obs = jax.random.normal(k1, (8, obs_size), jnp.float32)
    out = jax.block_until_ready(
        actor_forward(obs, params, matmul_dtype=jnp.float32))
    ref = _reference_forward(obs, params)
    assert out.shape == (8, action_size)
    assert jnp.allclose(jnp.sum(out, axis=1), 1.0, atol=1e-5)
    assert jnp.allclose(out, ref, atol=1e-5, rtol=1e-5)

    # (2) Default fast path (bf16 matmul inputs + approx reciprocal), padded batch,
    #     single tile.  Relaxed tolerance per bf16 accuracy.
    obs2 = jax.random.normal(k2, (300, obs_size), jnp.float32)
    out2 = jax.block_until_ready(actor_forward(obs2, params))
    ref2 = _reference_forward(obs2, params)
    assert out2.shape == (300, action_size)
    assert jnp.allclose(jnp.sum(out2, axis=1), 1.0, atol=1e-2)
    assert jnp.allclose(out2, ref2, atol=2e-2)

    # (3) Multi-tile fast path: batch > block_batch -> even tile count exercises
    #     the batch grid and the resident-weight index_maps.
    obs3 = jax.random.normal(k3, (2304, obs_size), jnp.float32)
    out3 = jax.block_until_ready(actor_forward(obs3, params))
    ref3 = _reference_forward(obs3, params)
    assert out3.shape == (2304, action_size)
    assert jnp.allclose(jnp.sum(out3, axis=1), 1.0, atol=1e-2)
    assert jnp.allclose(out3, ref3, atol=2e-2)

    print("KERNEL_OK")
</pallas_src>

<mosaic_0001>
module attributes {stable_mosaic.version = 11 : i64} {
  func.func @_actor_kernel(%arg0: i32, %arg1: memref<8x32xf32, #tpu.memory_space<vmem>>, %arg2: memref<32x256xf32, #tpu.memory_space<vmem>>, %arg3: memref<1x256xf32, #tpu.memory_space<vmem>>, %arg4: memref<256x256xf32, #tpu.memory_space<vmem>>, %arg5: memref<1x256xf32, #tpu.memory_space<vmem>>, %arg6: memref<256x128xf32, #tpu.memory_space<vmem>>, %arg7: memref<1x128xf32, #tpu.memory_space<vmem>>, %arg8: memref<128x128xf32, #tpu.memory_space<vmem>>, %arg9: memref<1x128xf32, #tpu.memory_space<vmem>>, %arg10: memref<128x128xf32, #tpu.memory_space<vmem>>, %arg11: memref<1x128xf32, #tpu.memory_space<vmem>>, %arg12: memref<8x128xf32, #tpu.memory_space<vmem>>) attributes {dimension_semantics = [#tpu.dimension_semantics<parallel>], iteration_bounds = array<i64: 1>, scalar_prefetch = 0 : i64, scratch_operands = 0 : i64, tpu.core_type = #tpu.core_type<tc>, window_params = [{transform_indices = @transform_0, window_bounds = array<i64: 8, 32>}, {pipeline_mode = #tpu.pipeline_mode<synchronous>, transform_indices = @transform_1, window_bounds = array<i64: 32, 256>}, {pipeline_mode = #tpu.pipeline_mode<synchronous>, transform_indices = @transform_2, window_bounds = array<i64: 1, 256>}, {pipeline_mode = #tpu.pipeline_mode<synchronous>, transform_indices = @transform_3, window_bounds = array<i64: 256, 256>}, {pipeline_mode = #tpu.pipeline_mode<synchronous>, transform_indices = @transform_4, window_bounds = array<i64: 1, 256>}, {pipeline_mode = #tpu.pipeline_mode<synchronous>, transform_indices = @transform_5, window_bounds = array<i64: 256, 128>}, {pipeline_mode = #tpu.pipeline_mode<synchronous>, transform_indices = @transform_6, window_bounds = array<i64: 1, 128>}, {pipeline_mode = #tpu.pipeline_mode<synchronous>, transform_indices = @transform_7, window_bounds = array<i64: 128, 128>}, {pipeline_mode = #tpu.pipeline_mode<synchronous>, transform_indices = @transform_8, window_bounds = array<i64: 1, 128>}, {pipeline_mode = #tpu.pipeline_mode<synchronous>, transform_indices = @transform_9, window_bounds = array<i64: 128, 128>}, {pipeline_mode = #tpu.pipeline_mode<synchronous>, transform_indices = @transform_10, window_bounds = array<i64: 1, 128>}, {transform_indices = @transform_11, window_bounds = array<i64: 8, 128>}]} {
    %c0 = arith.constant 0 : index
    %c0_0 = arith.constant 0 : index
    %0 = vector.load %arg1[%c0, %c0_0] : memref<8x32xf32, #tpu.memory_space<vmem>>, vector<8x32xf32>
    %c0_1 = arith.constant 0 : index
    %c0_2 = arith.constant 0 : index
    %1 = vector.load %arg2[%c0_1, %c0_2] : memref<32x256xf32, #tpu.memory_space<vmem>>, vector<32x256xf32>
    %cst = arith.constant dense<0.000000e+00> : vector<8x256xf32>
    %2 = tpu.matmul %0, %1, %cst {dimension_numbers = #tpu.dot_dimension_numbers<[1], [0], [0], [1], [0, 0, 1, 1], [], []>} : vector<8x32xf32>, vector<32x256xf32>, vector<8x256xf32> -> vector<8x256xf32>
    %c0_3 = arith.constant 0 : index
    %c0_4 = arith.constant 0 : index
    %3 = vector.load %arg3[%c0_3, %c0_4] : memref<1x256xf32, #tpu.memory_space<vmem>>, vector<1x256xf32>
    %4 = vector.broadcast %3 : vector<1x256xf32> to vector<8x256xf32>
    %5 = arith.addf %2, %4 : vector<8x256xf32>
    %6 = math.tanh %5 : vector<8x256xf32>
    %c0_5 = arith.constant 0 : index
    %c0_6 = arith.constant 0 : index
    %7 = vector.load %arg4[%c0_5, %c0_6] : memref<256x256xf32, #tpu.memory_space<vmem>>, vector<256x256xf32>
    %cst_7 = arith.constant dense<0.000000e+00> : vector<8x256xf32>
    %8 = tpu.matmul %6, %7, %cst_7 {dimension_numbers = #tpu.dot_dimension_numbers<[1], [0], [0], [1], [0, 0, 1, 1], [], []>} : vector<8x256xf32>, vector<256x256xf32>, vector<8x256xf32> -> vector<8x256xf32>
    %c0_8 = arith.constant 0 : index
    %c0_9 = arith.constant 0 : index
    %9 = vector.load %arg5[%c0_8, %c0_9] : memref<1x256xf32, #tpu.memory_space<vmem>>, vector<1x256xf32>
    %10 = vector.broadcast %9 : vector<1x256xf32> to vector<8x256xf32>
    %11 = arith.addf %8, %10 : vector<8x256xf32>
    %12 = math.tanh %11 : vector<8x256xf32>
    %c0_10 = arith.constant 0 : index
    %c0_11 = arith.constant 0 : index
    %13 = vector.load %arg6[%c0_10, %c0_11] : memref<256x128xf32, #tpu.memory_space<vmem>>, vector<256x128xf32>
    %cst_12 = arith.constant dense<0.000000e+00> : vector<8x128xf32>
    %14 = tpu.matmul %12, %13, %cst_12 {dimension_numbers = #tpu.dot_dimension_numbers<[1], [0], [0], [1], [0, 0, 1, 1], [], []>} : vector<8x256xf32>, vector<256x128xf32>, vector<8x128xf32> -> vector<8x128xf32>
    %c0_13 = arith.constant 0 : index
    %c0_14 = arith.constant 0 : index
    %15 = vector.load %arg7[%c0_13, %c0_14] : memref<1x128xf32, #tpu.memory_space<vmem>>, vector<1x128xf32>
    %16 = vector.broadcast %15 : vector<1x128xf32> to vector<8x128xf32>
    %17 = arith.addf %14, %16 : vector<8x128xf32>
    %18 = math.tanh %17 : vector<8x128xf32>
    %c0_15 = arith.constant 0 : index
    %c0_16 = arith.constant 0 : index
    %19 = vector.load %arg8[%c0_15, %c0_16] : memref<128x128xf32, #tpu.memory_space<vmem>>, vector<128x128xf32>
    %cst_17 = arith.constant dense<0.000000e+00> : vector<8x128xf32>
    %20 = tpu.matmul %18, %19, %cst_17 {dimension_numbers = #tpu.dot_dimension_numbers<[1], [0], [0], [1], [0, 0, 1, 1], [], []>} : vector<8x128xf32>, vector<128x128xf32>, vector<8x128xf32> -> vector<8x128xf32>
    %c0_18 = arith.constant 0 : index
    %c0_19 = arith.constant 0 : index
    %21 = vector.load %arg9[%c0_18, %c0_19] : memref<1x128xf32, #tpu.memory_space<vmem>>, vector<1x128xf32>
    %22 = vector.broadcast %21 : vector<1x128xf32> to vector<8x128xf32>
    %23 = arith.addf %20, %22 : vector<8x128xf32>
    %24 = math.tanh %23 : vector<8x128xf32>
    %c0_20 = arith.constant 0 : index
    %c0_21 = arith.constant 0 : index
    %25 = vector.load %arg10[%c0_20, %c0_21] : memref<128x128xf32, #tpu.memory_space<vmem>>, vector<128x128xf32>
    %cst_22 = arith.constant dense<0.000000e+00> : vector<8x128xf32>
    %26 = tpu.matmul %24, %25, %cst_22 {dimension_numbers = #tpu.dot_dimension_numbers<[1], [0], [0], [1], [0, 0, 1, 1], [], []>} : vector<8x128xf32>, vector<128x128xf32>, vector<8x128xf32> -> vector<8x128xf32>
    %c0_23 = arith.constant 0 : index
    %c0_24 = arith.constant 0 : index
    %27 = vector.load %arg11[%c0_23, %c0_24] : memref<1x128xf32, #tpu.memory_space<vmem>>, vector<1x128xf32>
    %28 = vector.broadcast %27 : vector<1x128xf32> to vector<8x128xf32>
    %29 = arith.addf %26, %28 : vector<8x128xf32>
    %cst_25 = arith.constant dense<0xFF800000> : vector<8xf32>
    %30 = vector.multi_reduction <maximumf>, %29, %cst_25 [1] : vector<8x128xf32> to vector<8xf32>
    %31 = vector.shape_cast %30 : vector<8xf32> to vector<8x1xf32>
    %32 = vector.broadcast %31 : vector<8x1xf32> to vector<8x128xf32>
    %33 = arith.subf %29, %32 : vector<8x128xf32>
    %34 = math.exp %33 : vector<8x128xf32>
    %cst_26 = arith.constant dense<0.000000e+00> : vector<8xf32>
    %35 = vector.multi_reduction <add>, %34, %cst_26 [1] : vector<8x128xf32> to vector<8xf32>
    %36 = vector.shape_cast %35 : vector<8xf32> to vector<8x1xf32>
    %37 = tpu.reciprocal %36 : vector<8x1xf32> -> vector<8x1xf32>
    %38 = vector.broadcast %37 : vector<8x1xf32> to vector<8x128xf32>
    %39 = arith.mulf %34, %38 : vector<8x128xf32>
    %c0_27 = arith.constant 0 : index
    %c0_28 = arith.constant 0 : index
    %40 = vector.load %arg12[%c0_27, %c0_28] : memref<8x128xf32, #tpu.memory_space<vmem>>, vector<8x128xf32>
    tpu.vector_store %arg12[%c0_27, %c0_28], %39 {strides = array<i32>} : memref<8x128xf32, #tpu.memory_space<vmem>>, vector<8x128xf32>,
    return
  }
  func.func @transform_0(%arg0: i32) -> (i32, i32) {
    %c0_i32 = arith.constant 0 : i32
    %c0_i32_0 = arith.constant 0 : i32
    return %arg0, %c0_i32 : i32, i32
  }
  func.func @transform_1(%arg0: i32) -> (i32, i32) {
    %c0_i32 = arith.constant 0 : i32
    %c0_i32_0 = arith.constant 0 : i32
    %c0_i32_1 = arith.constant 0 : i32
    return %c0_i32, %c0_i32_0 : i32, i32
  }
  func.func @transform_2(%arg0: i32) -> (i32, i32) {
    %c0_i32 = arith.constant 0 : i32
    %c0_i32_0 = arith.constant 0 : i32
    %c0_i32_1 = arith.constant 0 : i32
    return %c0_i32, %c0_i32_0 : i32, i32
  }
  func.func @transform_3(%arg0: i32) -> (i32, i32) {
    %c0_i32 = arith.constant 0 : i32
    %c0_i32_0 = arith.constant 0 : i32
    %c0_i32_1 = arith.constant 0 : i32
    return %c0_i32, %c0_i32_0 : i32, i32
  }
  func.func @transform_4(%arg0: i32) -> (i32, i32) {
    %c0_i32 = arith.constant 0 : i32
    %c0_i32_0 = arith.constant 0 : i32
    %c0_i32_1 = arith.constant 0 : i32
    return %c0_i32, %c0_i32_0 : i32, i32
  }
  func.func @transform_5(%arg0: i32) -> (i32, i32) {
    %c0_i32 = arith.constant 0 : i32
    %c0_i32_0 = arith.constant 0 : i32
    %c0_i32_1 = arith.constant 0 : i32
    return %c0_i32, %c0_i32_0 : i32, i32
  }
  func.func @transform_6(%arg0: i32) -> (i32, i32) {
    %c0_i32 = arith.constant 0 : i32
    %c0_i32_0 = arith.constant 0 : i32
    %c0_i32_1 = arith.constant 0 : i32
    return %c0_i32, %c0_i32_0 : i32, i32
  }
  func.func @transform_7(%arg0: i32) -> (i32, i32) {
    %c0_i32 = arith.constant 0 : i32
    %c0_i32_0 = arith.constant 0 : i32
    %c0_i32_1 = arith.constant 0 : i32
    return %c0_i32, %c0_i32_0 : i32, i32
  }
  func.func @transform_8(%arg0: i32) -> (i32, i32) {
    %c0_i32 = arith.constant 0 : i32
    %c0_i32_0 = arith.constant 0 : i32
    %c0_i32_1 = arith.constant 0 : i32
    return %c0_i32, %c0_i32_0 : i32, i32
  }
  func.func @transform_9(%arg0: i32) -> (i32, i32) {
    %c0_i32 = arith.constant 0 : i32
    %c0_i32_0 = arith.constant 0 : i32
    %c0_i32_1 = arith.constant 0 : i32
    return %c0_i32, %c0_i32_0 : i32, i32
  }
  func.func @transform_10(%arg0: i32) -> (i32, i32) {
    %c0_i32 = arith.constant 0 : i32
    %c0_i32_0 = arith.constant 0 : i32
    %c0_i32_1 = arith.constant 0 : i32
    return %c0_i32, %c0_i32_0 : i32, i32
  }
  func.func @transform_11(%arg0: i32) -> (i32, i32) {
    %c0_i32 = arith.constant 0 : i32
    %c0_i32_0 = arith.constant 0 : i32
    return %arg0, %c0_i32 : i32, i32
  }
}

</mosaic_0001>

<bundles_post_ra>
// kernel: actor_forward.1
= control target key start
LH: loop header
LB: loop body
LE: loop exit
PB: predicated region body
PF: predicated region fallthrough
CT: control target
= control target key end

     0   :  { %16 = vsyncpa [#allocation3], 0  ;;  %s1361_s0 = inlined_call_operand.vmem [shape: f32[8,32], index: 0, kind: input, shape index: {}]   ;;  %s1362_s1 = inlined_call_operand.hbm [shape: f32[32,256], index: 1, kind: input, shape index: {}]   ;;  %s1363_s2 = inlined_call_operand.vmem [shape: f32[1,256], index: 2, kind: input, shape index: {}]   ;;  %s1364_s3 = inlined_call_operand.hbm [shape: f32[256,256], index: 3, kind: input, shape index: {}]   ;;  %s1365_s4 = inlined_call_operand.vmem [shape: f32[1,256], index: 4, kind: input, shape index: {}]   ;;  %s1366_s5 = inlined_call_operand.vmem [shape: f32[256,128], index: 5, kind: input, shape index: {}]   ;;  %s1367_s6 = inlined_call_operand.vmem [shape: f32[1,128], index: 6, kind: input, shape index: {}]   ;;  %s1368_s7 = inlined_call_operand.vmem [shape: f32[128,128], index: 7, kind: input, shape index: {}]   ;;  %s1369_s8 = inlined_call_operand.vmem [shape: f32[1,128], index: 8, kind: input, shape index: {}]   ;;  %s1370_s9 = inlined_call_operand.vmem [shape: f32[128,128], index: 9, kind: input, shape index: {}]   ;;  %s1371_s10 = inlined_call_operand.vmem [shape: f32[1,128], index: 10, kind: input, shape index: {}]   ;;  %s1372_s11 = inlined_call_operand.hbm [shape: f32[8,128], index: 11, kind: output, shape index: {}]  }
   0x1   :  { %17 = vsyncpa [#allocation6], 0 }
   0x2   :  { %18 = vsyncpa [#allocation4], 0  ;;  %s1028_s17 = smov [#allocation2]   ;;  %s956_s21 = scalar_lea.hbm %s1362_s1, 1024 }
   0x3   :  { %s26_s18 = sshll.u32 %s1028_s17, 4  ;;  %p957_p0 = scmp.ne.s32.totalorder %s1362_s1, %s956_s21  ;;  %s27_s18 = int_to_ptr.vmem [resolvable:$true] %s26_s18 }
   0x4   :  { %p960_p1 = scmp.lt.u32.totalorder %s956_s21, %s1362_s1 }
   0x6   :  { %p962_p2 = pnand %p960_p1, %p957_p0 }
   0x8   :  { %965 = shalt.err (!%p962_p2)
}
   0x9   :  { %s966_s26 = scalar_lea.vmem %s27_s18, 1024  ;;  %p971_p4 = scmp.lt.s32.totalorder %s27_s18, %s27_s18 }
   0xa   :  { %p967_p3 = scmp.ne.s32.totalorder %s27_s18, %s966_s26  ;;  %p972_p5 = scmp.lt.s32.totalorder %s966_s26, %s966_s26 }
   0xc   :  { %p973_p6 = por %p972_p5, %p971_p4 }
   0xe   :  { %p974_p7 = pnand %p973_p6, %p967_p3 }
  0x10   :  { %977 = shalt.err (!%p974_p7)
}
  0x11   :  { %s1029_s27 = smov 256   ;;  %s1030_s28 = smov 16  }
  0x12   :  { %32 = dma.hbm_to_vmem [thread:$0]  %s1362_s1, 1024, %s27_s18, [#allocation3], %s1029_s27, %s1029_s27, %s1030_s28  }
  0x13   :  { %s1031_s12 = smov [#allocation5]   ;;  %s978_s16 = scalar_lea.hbm %s1364_s3, 8192 }
  0x14   :  { %s40_s13 = sshll.u32 %s1031_s12, 4  ;;  %p979_p8 = scmp.ne.s32.totalorder %s1364_s3, %s978_s16  ;;  %s41_s13 = int_to_ptr.vmem [resolvable:$true] %s40_s13 }
  0x15   :  { %p982_p9 = scmp.lt.u32.totalorder %s978_s16, %s1364_s3 }
  0x17   :  { %p984_p10 = pnand %p982_p9, %p979_p8 }
  0x19   :  { %987 = shalt.err (!%p984_p10)
}
  0x1a   :  { %s988_s22 = scalar_lea.vmem %s41_s13, 8192  ;;  %p993_p12 = scmp.lt.s32.totalorder %s41_s13, %s41_s13 }
  0x1b   :  { %p989_p11 = scmp.ne.s32.totalorder %s41_s13, %s988_s22  ;;  %p994_p13 = scmp.lt.s32.totalorder %s988_s22, %s988_s22 }
  0x1d   :  { %p995_p0 = por %p994_p13, %p993_p12 }
  0x1f   :  { %p996_p1 = pnand %p995_p0, %p989_p11 }
  0x21   :  { %999 = shalt.err (!%p996_p1)
}
  0x22   :  { %46 = dma.hbm_to_vmem [thread:$0]  %s1364_s3, 8192, %s41_s13, [#allocation6], %s1029_s27, %s1029_s27, %s1030_s28  }
  0x23   :  { %1022 = dma.done.wait [#allocation3], 1024  }
  0x24   :  { %1023 = vsyncadd [#allocation3], 4294966272 }
  0x25   :  { %1024 = dma.done.wait [#allocation6], 8192  }
  0x26   :  { %1025 = vsyncadd [#allocation6], 4294959104  ;;  %v1032_v0 = vmov 0.0   ;;  %v69_v1 = vld [vmem:[#allocation2 + $0x8] sm:$0xff]  ;;  %v71_v2 = vld [vmem:[#allocation2 + $0x18] sm:$0xff]  ;;  %vm88_vm0 = vcmask 261120  }
  0x27   :  { %156 = vmatprep.mubr.f32.mxu0 %v1032_v0  ;;  %v68_v3 = vld [vmem:[#allocation2] sm:$0xff]  ;;  %v780_v4 = vpack.c.bf16 %v71_v2, %v69_v1  ;;  %v70_v5 = vld [vmem:[#allocation2 + $0x10] sm:$0xff]  ;;  %v73_v6 = vld [vmem:[#allocation2 + $0x28] sm:$0xff]  ;;  %vm1034_vm1 = vmmov 0  }
  0x28   :  { %v75_v7 = vld [vmem:[#allocation2 + $0x38] sm:$0xff]  ;;  %v782_v8 = vpack.c.bf16 %v70_v5, %v68_v3  ;;  %v72_v10 = vld [vmem:[#allocation2 + $0x20] sm:$0xff]  ;;  %v74_v11 = vld [vmem:[#allocation2 + $0x30] sm:$0xff] }
  0x29   :  { %v784_v9 = vpack.c.bf16 %v75_v7, %v73_v6  ;;  %781 = vmatprep.subr.bf16.mxu0 %v780_v4  ;;  %v166_v12 = vld [vmem:[#allocation5 + $0x8] sm:$0xff]  ;;  %v168_v13 = vld [vmem:[#allocation5 + $0x18] sm:$0xff]  ;;  %v165_v14 = vld [vmem:[#allocation5] sm:$0xff]  ;;  %v786_v15 = vpack.c.bf16 %v74_v11, %v72_v10 }
  0x2a   :  { %783 = vmatpush1.bf16.msra.mxu0 %v782_v8  ;;  %v788_v16 = vpack.c.bf16 %v168_v13, %v166_v12  ;;  %v167_v17 = vld [vmem:[#allocation5 + $0x10] sm:$0xff]  ;;  %v170_v18 = vld [vmem:[#allocation5 + $0x28] sm:$0xff]  ;;  %v172_v19 = vld [vmem:[#allocation5 + $0x38] sm:$0xff] }
  0x2b   :  { %785 = vmatprep.subr.bf16.mxu0 %v784_v9  ;;  %v790_v20 = vpack.c.bf16 %v167_v17, %v165_v14  ;;  %v792_v21 = vpack.c.bf16 %v172_v19, %v170_v18  ;;  %v169_v22 = vld [vmem:[#allocation5 + $0x20] sm:$0xff]  ;;  %v171_v23 = vld [vmem:[#allocation5 + $0x30] sm:$0xff]  ;;  %v174_v24 = vld [vmem:[#allocation5 + $0x48] sm:$0xff] }
  0x2c   :  { %789 = vmatprep.subr.bf16.mxu1 %v788_v16  ;;  %v176_v25 = vld [vmem:[#allocation5 + $0x58] sm:$0xff]  ;;  %v794_v26 = vpack.c.bf16 %v171_v23, %v169_v22  ;;  %v67_v27 = vld [vmem:[%s1361_s0] sm:$0xff]  ;;  %v175_v30 = vld [vmem:[#allocation5 + $0x50] sm:$0xff] }
  0x2d   :  { %791 = vmatpush1.bf16.msra.mxu1 %v790_v20  ;;  %v796_v28 = vpack.c.bf16 %v176_v25, %v174_v24  ;;  %v173_v29 = vld [vmem:[#allocation5 + $0x40] sm:$0xff]  ;;  %v178_v31 = vld [vmem:[#allocation5 + $0x68] sm:$0xff]  ;;  %v180_v32 = vld [vmem:[#allocation5 + $0x78] sm:$0xff] }
  0x2e   :  { %787 = vmatpush1.bf16.msra.mxu0 %v786_v15  ;;  %793 = vmatprep.subr.bf16.mxu1 %v792_v21  ;;  %v798_v33 = vpack.c.bf16 %v175_v30, %v173_v29  ;;  %v800_v34 = vpack.c.bf16 %v180_v32, %v178_v31  ;;  %v177_v35 = vld [vmem:[#allocation5 + $0x60] sm:$0xff]  ;;  %v179_v36 = vld [vmem:[#allocation5 + $0x70] sm:$0xff]  ;;  %v182_v37 = vld [vmem:[#allocation5 + $0x88] sm:$0xff] }
  0x2f   :  { %v184_v38 = vld [vmem:[#allocation5 + $0x98] sm:$0xff]  ;;  %v802_v39 = vpack.c.bf16 %v179_v36, %v177_v35  ;;  %v181_v41 = vld [vmem:[#allocation5 + $0x80] sm:$0xff]  ;;  %v183_v42 = vld [vmem:[#allocation5 + $0x90] sm:$0xff] }
  0x30   :  { %v804_v40 = vpack.c.bf16 %v184_v38, %v182_v37  ;;  %v186_v43 = vld [vmem:[#allocation5 + $0xa8] sm:$0xff]  ;;  %v188_v44 = vld [vmem:[#allocation5 + $0xb8] sm:$0xff]  ;;  %v806_v45 = vpack.c.bf16 %v183_v42, %v181_v41  ;;  %v185_v47 = vld [vmem:[#allocation5 + $0xa0] sm:$0xff] }
  0x31   :  { %637 = vmatmul.mubr.msk.f32.vlgmr.msra.gmra.mrb[0].mxu0 %vm88_vm0, %v67_v27  ;;  %795 = vmatpush1.bf16.msra.mxu1 %v794_v26  ;;  %v808_v46 = vpack.c.bf16 %v188_v44, %v186_v43  ;;  %v187_v48 = vld [vmem:[#allocation5 + $0xb0] sm:$0xff]  ;;  %v190_v49 = vld [vmem:[#allocation5 + $0xc8] sm:$0xff]  ;;  %v192_v50 = vld [vmem:[#allocation5 + $0xd8] sm:$0xff] }
  0x32   :  { %797 = vmatprep.subr.bf16.mxu1 %v796_v28  ;;  %v810_v51 = vpack.c.bf16 %v187_v48, %v185_v47  ;;  %v812_v52 = vpack.c.bf16 %v192_v50, %v190_v49  ;;  %v189_v53 = vld [vmem:[#allocation5 + $0xc0] sm:$0xff]  ;;  %v191_v54 = vld [vmem:[#allocation5 + $0xd0] sm:$0xff]  ;;  %v194_v55 = vld [vmem:[#allocation5 + $0xe8] sm:$0xff] }
  0x33   :  { %v196_v56 = vld [vmem:[#allocation5 + $0xf8] sm:$0xff]  ;;  %v814_v57 = vpack.c.bf16 %v191_v54, %v189_v53  ;;  %v193_v59 = vld [vmem:[#allocation5 + $0xe0] sm:$0xff]  ;;  %v195_v60 = vld [vmem:[#allocation5 + $0xf0] sm:$0xff] }
  0x34   :  { %v816_v58 = vpack.c.bf16 %v196_v56, %v194_v55  ;;  %v198_v61 = vld [vmem:[#allocation5 + $0x108] sm:$0xff]  ;;  %v200_v62 = vld [vmem:[#allocation5 + $0x118] sm:$0xff]  ;;  %v818_v63 = vpack.c.bf16 %v195_v60, %v193_v59  ;;  %v197_v2 = vld [vmem:[#allocation5 + $0x100] sm:$0xff] }
  0x35   :  { %799 = vmatpush1.bf16.msra.mxu1 %v798_v33  ;;  %v820_v1 = vpack.c.bf16 %v200_v62, %v198_v61  ;;  %v199_v3 = vld [vmem:[#allocation5 + $0x110] sm:$0xff]  ;;  %v202_v4 = vld [vmem:[#allocation5 + $0x128] sm:$0xff]  ;;  %v204_v5 = vld [vmem:[#allocation5 + $0x138] sm:$0xff] }
  0x36   :  { %801 = vmatprep.subr.bf16.mxu1 %v800_v34  ;;  %v822_v6 = vpack.c.bf16 %v199_v3, %v197_v2  ;;  %v824_v7 = vpack.c.bf16 %v204_v5, %v202_v4  ;;  %v201_v8 = vld [vmem:[#allocation5 + $0x120] sm:$0xff]  ;;  %v203_v9 = vld [vmem:[#allocation5 + $0x130] sm:$0xff]  ;;  %v206_v10 = vld [vmem:[#allocation5 + $0x148] sm:$0xff] }
  0x37   :  { %v208_v11 = vld [vmem:[#allocation5 + $0x158] sm:$0xff]  ;;  %v826_v12 = vpack.c.bf16 %v203_v9, %v201_v8  ;;  %v205_v14 = vld [vmem:[#allocation5 + $0x140] sm:$0xff]  ;;  %v207_v15 = vld [vmem:[#allocation5 + $0x150] sm:$0xff]  ;;  %v78_v8 = vlaneseq }
  0x38   :  { %v828_v13 = vpack.c.bf16 %v208_v11, %v206_v10  ;;  %v210_v16 = vld [vmem:[#allocation5 + $0x168] sm:$0xff]  ;;  %v212_v17 = vld [vmem:[#allocation5 + $0x178] sm:$0xff]  ;;  %v830_v18 = vpack.c.bf16 %v207_v15, %v205_v14  ;;  %v209_v20 = vld [vmem:[#allocation5 + $0x160] sm:$0xff] }
  0x39   :  { %803 = vmatpush1.bf16.msra.mxu1 %v802_v39  ;;  %v832_v19 = vpack.c.bf16 %v212_v17, %v210_v16  ;;  %v211_v21 = vld [vmem:[#allocation5 + $0x170] sm:$0xff]  ;;  %v214_v23 = vld [vmem:[#allocation5 + $0x188] sm:$0xff]  ;;  %v216_v24 = vld [vmem:[#allocation5 + $0x198] sm:$0xff]  ;;  %v79_v9 = vshrl.u32 %v78_v8, 7 }
  0x3a   :  { %805 = vmatprep.subr.bf16.mxu1 %v804_v40  ;;  %v834_v22 = vpack.c.bf16 %v211_v21, %v209_v20  ;;  %v836_v25 = vpack.c.bf16 %v216_v24, %v214_v23  ;;  %v213_v26 = vld [vmem:[#allocation5 + $0x180] sm:$0xff]  ;;  %v215_v27 = vld [vmem:[#allocation5 + $0x190] sm:$0xff]  ;;  %v218_v29 = vld [vmem:[#allocation5 + $0x1a8] sm:$0xff] }
  0x3b   :  { %v838_v28 = vpack.c.bf16 %v215_v27, %v213_v26  ;;  %v220_v30 = vld [vmem:[#allocation5 + $0x1b8] sm:$0xff]  ;;  %v217_v32 = vld [vmem:[#allocation5 + $0x1a0] sm:$0xff]  ;;  %v219_v33 = vld [vmem:[#allocation5 + $0x1b0] sm:$0xff]  ;;  %v80_v10 = vsub.s32 0, %v79_v9 }
  0x3c   :  { %v840_v31 = vpack.c.bf16 %v220_v30, %v218_v29  ;;  %v842_v34 = vpack.c.bf16 %v219_v33, %v217_v32  ;;  %v222_v35 = vld [vmem:[#allocation5 + $0x1c8] sm:$0xff]  ;;  %v224_v36 = vld [vmem:[#allocation5 + $0x1d8] sm:$0xff]  ;;  %v221_v37 = vld [vmem:[#allocation5 + $0x1c0] sm:$0xff] }
  0x3d   :  { %807 = vmatpush1.bf16.msra.mxu1 %v806_v45  ;;  %v844_v38 = vpack.c.bf16 %v224_v36, %v222_v35  ;;  %v223_v39 = vld [vmem:[#allocation5 + $0x1d0] sm:$0xff]  ;;  %v226_v40 = vld [vmem:[#allocation5 + $0x1e8] sm:$0xff]  ;;  %v228_v41 = vld [vmem:[#allocation5 + $0x1f8] sm:$0xff] }
  0x3e   :  { %809 = vmatprep.subr.bf16.mxu1 %v808_v46  ;;  %v846_v42 = vpack.c.bf16 %v223_v39, %v221_v37  ;;  %v848_v43 = vpack.c.bf16 %v228_v41, %v226_v40  ;;  %v225_v44 = vld [vmem:[#allocation5 + $0x1e0] sm:$0xff]  ;;  %v227_v45 = vld [vmem:[#allocation5 + $0x1f0] sm:$0xff]  ;;  %v331_v48 = vld [vmem:[%s1366_s5 + $0x88] sm:$0xff] }
  0x3f   :  { %v850_v46 = vpack.c.bf16 %v227_v45, %v225_v44  ;;  %v330_v47 = vld [vmem:[%s1366_s5 + $0x80] sm:$0xff]  ;;  %v333_v53 = vld [vmem:[%s1366_s5 + $0x98] sm:$0xff]  ;;  %v316_v56 = vld [vmem:[%s1366_s5 + $0x10] sm:$0xff]  ;;  %v1033_v45 = vmov 0.0|0.0  }
  0x40   :  { %v314_v49 = vld [vmem:[%s1366_s5] sm:$0xff]  ;;  %v852_v50 = vpack.c.bf16 %v331_v48, %v330_v47  ;;  %v335_v59 = vld [vmem:[%s1366_s5 + $0xa8] sm:$0xff]  ;;  %v337_v2 = vld [vmem:[%s1366_s5 + $0xb8] sm:$0xff] }
  0x41   :  { %811 = vmatpush1.bf16.msra.mxu1 %v810_v51  ;;  %v315_v51 = vld [vmem:[%s1366_s5 + $0x8] sm:$0xff]  ;;  %v318_v62 = vld [vmem:[%s1366_s5 + $0x20] sm:$0xff]  ;;  %v320_v5 = vld [vmem:[%s1366_s5 + $0x30] sm:$0xff] }
  0x42   :  { %813 = vmatprep.subr.bf16.mxu1 %v812_v52  ;;  %v332_v52 = vld [vmem:[%s1366_s5 + $0x90] sm:$0xff]  ;;  %v854_v54 = vpack.c.bf16 %v315_v51, %v314_v49  ;;  %853 = vmatprep.subr.bf16.mxu0 %v852_v50  ;;  %v76_v11 = vld [vmem:[%s1363_s2] sm:$0x3]  ;;  %v327_v37 = vld [vmem:[%s1366_s5 + $0x68] sm:$0xff] }
  0x43   :  { %v856_v55 = vpack.c.bf16 %v333_v53, %v332_v52  ;;  %v338_v21 = vld [vmem:[%s1366_s5 + $0xc0] sm:$0xff]  ;;  %v340_v27 = vld [vmem:[%s1366_s5 + $0xd0] sm:$0xff]  ;;  %v345_v39 = vld [vmem:[%s1366_s5 + $0xf8] sm:$0xff] }
  0x44   :  { %855 = vmatpush3.bf16.msra.mxu0 %v854_v54  ;;  %v322_v24 = vld [vmem:[%s1366_s5 + $0x40] sm:$0xff]  ;;  %v324_v30 = vld [vmem:[%s1366_s5 + $0x50] sm:$0xff]  ;;  %v425_v54 = vld [vmem:[%s1368_s7 + $0x8] sm:$0xff] }
  0x45   :  { %815 = vmatpush1.bf16.msra.mxu1 %v814_v57  ;;  %v317_v57 = vld [vmem:[%s1366_s5 + $0x18] sm:$0xff]  ;;  %857 = vmatprep.subr.bf16.mxu0 %v856_v55  ;;  %v342_v33 = vld [vmem:[%s1366_s5 + $0xe0] sm:$0xff] }
  0x46   :  { %817 = vmatprep.subr.bf16.mxu1 %v816_v58  ;;  %v334_v58 = vld [vmem:[%s1366_s5 + $0xa0] sm:$0xff]  ;;  %v858_v60 = vpack.c.bf16 %v317_v57, %v316_v56  ;;  %v426_v57 = vld [vmem:[%s1368_s7 + $0x10] sm:$0xff]  ;;  %v435_v8 = vld [vmem:[%s1368_s7 + $0x58] sm:$0xff] }
  0x47   :  { %v860_v61 = vpack.c.bf16 %v335_v59, %v334_v58  ;;  %v326_v35 = vld [vmem:[%s1366_s5 + $0x60] sm:$0xff]  ;;  %v427_v58 = vld [vmem:[%s1368_s7 + $0x18] sm:$0xff] }
  0x48   :  { %859 = vmatpush3.bf16.msra.mxu0 %v858_v60  ;;  %v878_v40 = vpack.c.bf16 %v327_v37, %v326_v35  ;;  %v424_v53 = vld [vmem:[%s1368_s7] sm:$0xff]  ;;  %v888_v60 = vpack.c.bf16 %v427_v58, %v426_v57  ;;  %v529_v37 = vld [vmem:[%s1370_s9 + $0x58] sm:$0xff] }
  0x49   :  { %819 = vmatpush1.bf16.msra.mxu1 %v818_v63  ;;  %v319_v63 = vld [vmem:[%s1366_s5 + $0x28] sm:$0xff]  ;;  %861 = vmatprep.subr.bf16.mxu0 %v860_v61  ;;  %v885_v55 = vpack.c.bf16 %v425_v54, %v424_v53  ;;  %v428_v61 = vld [vmem:[%s1368_s7 + $0x20] sm:$0xff] }
  0x4a   :  { %821 = vmatprep.subr.bf16.mxu1 %v820_v1  ;;  %v336_v1 = vld [vmem:[%s1366_s5 + $0xb0] sm:$0xff]  ;;  %v862_v3 = vpack.c.bf16 %v319_v63, %v318_v62  ;;  %v429_v62 = vld [vmem:[%s1368_s7 + $0x28] sm:$0xff] }
  0x4b   :  { %v864_v4 = vpack.c.bf16 %v337_v2, %v336_v1  ;;  %v891_v63 = vpack.c.bf16 %v429_v62, %v428_v61  ;;  %v430_v1 = vld [vmem:[%s1368_s7 + $0x30] sm:$0xff]  ;;  %v431_v2 = vld [vmem:[%s1368_s7 + $0x38] sm:$0xff] }
  0x4c   :  { %863 = vmatpush3.bf16.msra.mxu0 %v862_v3  ;;  %v894_v3 = vpack.c.bf16 %v431_v2, %v430_v1 }
  0x4d   :  { %823 = vmatpush1.bf16.msra.mxu1 %v822_v6  ;;  %v321_v6 = vld [vmem:[%s1366_s5 + $0x38] sm:$0xff]  ;;  %865 = vmatprep.subr.bf16.mxu0 %v864_v4  ;;  %v432_v4 = vld [vmem:[%s1368_s7 + $0x40] sm:$0xff] }
  0x4e   :  { %825 = vmatprep.subr.bf16.mxu1 %v824_v7  ;;  %v866_v7 = vpack.c.bf16 %v321_v6, %v320_v5  ;;  %v433_v5 = vld [vmem:[%s1368_s7 + $0x48] sm:$0xff] }
  0x4f   :  { %v897_v6 = vpack.c.bf16 %v433_v5, %v432_v4 }
  0x50   :  { %867 = vmatpush3.bf16.msra.mxu0 %v866_v7  ;;  %v434_v7 = vld [vmem:[%s1368_s7 + $0x50] sm:$0xff] }
  0x51   :  { %827 = vmatpush1.bf16.msra.mxu1 %v826_v12  ;;  %v84_v12 = vsub.s32 1, %v79_v9  ;;  %v900_v9 = vpack.c.bf16 %v435_v8, %v434_v7 }
  0x52   :  { %829 = vmatprep.subr.bf16.mxu1 %v828_v13  ;;  %v81_v13 = vrot.slane %v76_v11, %v80_v10 }
  0x53   :  { %v85_v14 = vrot.slane %v76_v11, %v84_v12  ;;  %v437_v11 = vld [vmem:[%s1368_s7 + $0x68] sm:$0xff] }
  0x55   :  { %831 = vmatpush1.bf16.msra.mxu1 %v830_v18 }
  0x56   :  { %833 = vmatprep.subr.bf16.mxu1 %v832_v19 }
  0x59   :  { %835 = vmatpush1.bf16.msra.mxu1 %v834_v22  ;;  %v339_v22 = vld [vmem:[%s1366_s5 + $0xc8] sm:$0xff] }
  0x5a   :  { %837 = vmatprep.subr.bf16.mxu1 %v836_v25  ;;  %v868_v23 = vpack.c.bf16 %v339_v22, %v338_v21  ;;  %v323_v25 = vld [vmem:[%s1366_s5 + $0x48] sm:$0xff]  ;;  %v522_v21 = vld [vmem:[%s1370_s9 + $0x20] sm:$0xff] }
  0x5b   :  { %v870_v26 = vpack.c.bf16 %v323_v25, %v322_v24  ;;  %v523_v22 = vld [vmem:[%s1370_s9 + $0x28] sm:$0xff]  ;;  %v524_v24 = vld [vmem:[%s1370_s9 + $0x30] sm:$0xff]  ;;  %v525_v25 = vld [vmem:[%s1370_s9 + $0x38] sm:$0xff] }
  0x5c   :  { %869 = vmatprep.subr.bf16.mxu0 %v868_v23  ;;  %v915_v23 = vpack.c.bf16 %v523_v22, %v522_v21 }
  0x5d   :  { %839 = vmatpush1.bf16.msra.mxu1 %v838_v28  ;;  %871 = vmatpush3.bf16.msra.mxu0 %v870_v26  ;;  %v341_v28 = vld [vmem:[%s1366_s5 + $0xd8] sm:$0xff]  ;;  %v918_v26 = vpack.c.bf16 %v525_v25, %v524_v24 }
  0x5e   :  { %841 = vmatprep.subr.bf16.mxu1 %v840_v31  ;;  %v872_v29 = vpack.c.bf16 %v341_v28, %v340_v27  ;;  %v325_v31 = vld [vmem:[%s1366_s5 + $0x58] sm:$0xff]  ;;  %v526_v27 = vld [vmem:[%s1370_s9 + $0x40] sm:$0xff]  ;;  %v527_v28 = vld [vmem:[%s1370_s9 + $0x48] sm:$0xff] }
  0x5f   :  { %v874_v32 = vpack.c.bf16 %v325_v31, %v324_v30  ;;  %v638_v31 = vld [vmem:[%s1367_s6] ss:$0 sm:$0xff] }
  0x60   :  { %873 = vmatprep.subr.bf16.mxu0 %v872_v29  ;;  %v921_v29 = vpack.c.bf16 %v527_v28, %v526_v27 }
  0x61   :  { %843 = vmatpush1.bf16.msra.mxu1 %v842_v34  ;;  %v343_v34 = vld [vmem:[%s1366_s5 + $0xe8] sm:$0xff]  ;;  %875 = vmatpush3.bf16.msra.mxu0 %v874_v32 }
  0x62   :  { %845 = vmatprep.subr.bf16.mxu1 %v844_v38  ;;  %v876_v36 = vpack.c.bf16 %v343_v34, %v342_v33  ;;  %v344_v38 = vld [vmem:[%s1366_s5 + $0xf0] sm:$0xff] }
  0x63   :  { %v880_v41 = vpack.c.bf16 %v345_v39, %v344_v38  ;;  %v530_v39 = vld [vmem:[%s1370_s9 + $0x60] sm:$0xff] }
  0x64   :  { %877 = vmatprep.subr.bf16.mxu0 %v876_v36  ;;  %v528_v36 = vld [vmem:[%s1370_s9 + $0x50] sm:$0xff] }
  0x65   :  { %847 = vmatpush1.bf16.msra.mxu1 %v846_v42  ;;  %v328_v42 = vld [vmem:[%s1366_s5 + $0x70] sm:$0xff]  ;;  %879 = vmatpush3.bf16.msra.mxu0 %v878_v40  ;;  %v924_v38 = vpack.c.bf16 %v529_v37, %v528_v36  ;;  %v531_v40 = vld [vmem:[%s1370_s9 + $0x68] sm:$0xff] }
  0x66   :  { %849 = vmatprep.subr.bf16.mxu1 %v848_v43  ;;  %v329_v43 = vld [vmem:[%s1366_s5 + $0x78] sm:$0xff]  ;;  %881 = vmatprep.subr.bf16.mxu0 %v880_v41  ;;  %v927_v41 = vpack.c.bf16 %v531_v40, %v530_v39 }
  0x67   :  { %v882_v44 = vpack.c.bf16 %v329_v43, %v328_v42  ;;  %v532_v42 = vld [vmem:[%s1370_s9 + $0x70] sm:$0xff]  ;;  %v533_v43 = vld [vmem:[%s1370_s9 + $0x78] sm:$0xff] }
  0x69   :  { %851 = vmatpush1.bf16.msra.mxu1 %v850_v46  ;;  %883 = vmatpush3.bf16.msra.mxu0 %v882_v44  ;;  %v229_v46 = vld [vmem:[%s1365_s4] sm:$0x3]  ;;  %v930_v44 = vpack.c.bf16 %v533_v43, %v532_v42 }
  0x6a   :  { %884 = vmatprep.subr.bf16.mxu0 %v1033_v45  ;;  %908 = vmatprep.subr.bf16.mxu1 %v1033_v45  ;;  %v234_v47 = vrot.slane %v229_v46, %v80_v10  ;;  %v238_v48 = vrot.slane %v229_v46, %v84_v12  ;;  %v436_v10 = vld [vmem:[%s1368_s7 + $0x60] sm:$0xff] }
  0x6b   :  { %v903_v12 = vpack.c.bf16 %v437_v11, %v436_v10  ;;  %v639_v46 = vld [vmem:[%s1369_s8] ss:$0 sm:$0xff]  ;;  %s1035_s8 = smov [#allocation7]  }
 0x104   :  { %v158_v15 = vpop.f32.mrb[0].mxu0 }
 0x105   :  { %v159_v16 = vadd.f32 %v158_v15, %v81_v13  ;;  %v160_v17 = vpop.f32.mrb[1].mxu0  ;;  %v438_v13 = vld [vmem:[%s1368_s7 + $0x70] sm:$0xff] }
 0x106   :  { %v161_v18 = vadd.f32 %v160_v17, %v85_v14  ;;  %v439_v14 = vld [vmem:[%s1368_s7 + $0x78] sm:$0xff]  ;;  %v519_v17 = vld [vmem:[%s1370_s9 + $0x8] sm:$0xff] }
 0x107   :  { %v906_v15 = vpack.c.bf16 %v439_v14, %v438_v13 }
 0x108   :  { %940 = vtanh.f32 %v161_v18  ;;  %v520_v18 = vld [vmem:[%s1370_s9 + $0x10] sm:$0xff] }
 0x109   :  { %942 = vtanh.f32 %v159_v16  ;;  %v518_v16 = vld [vmem:[%s1370_s9] sm:$0xff] }
 0x112   :  { %v941_v19 = vpop.eup %940 }
 0x113   :  { %v943_v20 = vpop.eup %942  ;;  %305 = vmatprep.mubr.f32.mxu1 %v941_v19  ;;  %v909_v19 = vpack.c.bf16 %v519_v17, %v518_v16 }
 0x114   :  { %306 = vmatmul.mubr.f32.vlgmr.msra.gmra.mrb[0].mxu1 %v943_v20 }
 0x115   :  { %777 = vmatprep.mubr.msk.f32.mxu1 %vm1034_vm1, %v1032_v0  ;;  %910 = vmatpush3.bf16.msra.mxu1 %v909_v19 }
 0x116   :  { %911 = vmatprep.subr.bf16.mxu1 %v1033_v45 }
 0x1e7   :  { %v307_v49 = vpop.f32.mrb[0].mxu1 }
 0x1e8   :  { %v308_v50 = vadd.f32 %v307_v49, %v234_v47  ;;  %v309_v51 = vpop.f32.mrb[1].mxu1 }
 0x1e9   :  { %v310_v52 = vadd.f32 %v309_v51, %v238_v48  ;;  %v640_v51 = vld [vmem:[%s1371_s10] ss:$0 sm:$0xff] }
 0x1eb   :  { %944 = vtanh.f32 %v310_v52 }
 0x1ec   :  { %946 = vtanh.f32 %v308_v50 }
 0x1f5   :  { %v945_v56 = vpop.eup %944 }
 0x1f6   :  { %v947_v59 = vpop.eup %946  ;;  %417 = vmatprep.mubr.f32.mxu0 %v945_v56 }
 0x1f7   :  { %418 = vmatmul.mubr.f32.vlgmr.msra.gmra.mrb[2].mxu0 %v947_v59 }
 0x1f8   :  { %886 = vmatpush3.bf16.msra.mxu0 %v885_v55  ;;  %742 = vmatprep.mubr.msk.f32.mxu0 %vm1034_vm1, %v1032_v0  ;;  %v521_v0 = vld [vmem:[%s1370_s9 + $0x18] sm:$0xff]  ;;  %s627_s9 = sshll.u32 %s1035_s8, 4  ;;  %s628_s9 = int_to_ptr.vmem [resolvable:$true] %s627_s9 }
 0x1f9   :  { %887 = vmatprep.subr.bf16.mxu0 %v1033_v45  ;;  %v912_v20 = vpack.c.bf16 %v521_v0, %v520_v18  ;;  %s1000_s20 = scalar_lea.vmem %s628_s9, 128  ;;  %p1005_p3 = scmp.lt.s32.totalorder %s628_s9, %s628_s9 }
 0x1fa   :  { %p1001_p2 = scmp.ne.s32.totalorder %s628_s9, %s1000_s20  ;;  %p1006_p4 = scmp.lt.s32.totalorder %s1000_s20, %s1000_s20 }
 0x1fb   :  { %913 = vmatpush3.bf16.msra.mxu1 %v912_v20 }
 0x1fc   :  { %889 = vmatpush3.bf16.msra.mxu0 %v888_v60  ;;  %914 = vmatprep.subr.bf16.mxu1 %v1033_v45  ;;  %p1007_p5 = por %p1006_p4, %p1005_p3 }
 0x1fd   :  { %890 = vmatprep.subr.bf16.mxu0 %v1033_v45 }
 0x1fe   :  { %p1008_p6 = pnand %p1007_p5, %p1001_p2 }
 0x1ff   :  { %916 = vmatpush3.bf16.msra.mxu1 %v915_v23 }
 0x200   :  { %892 = vmatpush3.bf16.msra.mxu0 %v891_v63  ;;  %917 = vmatprep.subr.bf16.mxu1 %v1033_v45 }
 0x201   :  { %893 = vmatprep.subr.bf16.mxu0 %v1033_v45 }
 0x203   :  { %919 = vmatpush3.bf16.msra.mxu1 %v918_v26 }
 0x204   :  { %895 = vmatpush3.bf16.msra.mxu0 %v894_v3  ;;  %920 = vmatprep.subr.bf16.mxu1 %v1033_v45 }
 0x205   :  { %896 = vmatprep.subr.bf16.mxu0 %v1033_v45 }
 0x207   :  { %922 = vmatpush3.bf16.msra.mxu1 %v921_v29 }
 0x208   :  { %898 = vmatpush3.bf16.msra.mxu0 %v897_v6  ;;  %923 = vmatprep.subr.bf16.mxu1 %v1033_v45 }
 0x209   :  { %899 = vmatprep.subr.bf16.mxu0 %v1033_v45 }
 0x20b   :  { %925 = vmatpush3.bf16.msra.mxu1 %v924_v38 }
 0x20c   :  { %901 = vmatpush3.bf16.msra.mxu0 %v900_v9  ;;  %926 = vmatprep.subr.bf16.mxu1 %v1033_v45 }
 0x20d   :  { %902 = vmatprep.subr.bf16.mxu0 %v1033_v45 }
 0x20f   :  { %928 = vmatpush3.bf16.msra.mxu1 %v927_v41 }
 0x210   :  { %904 = vmatpush3.bf16.msra.mxu0 %v903_v12  ;;  %929 = vmatprep.subr.bf16.mxu1 %v1033_v45 }
 0x211   :  { %905 = vmatprep.subr.bf16.mxu0 %v1033_v45 }
 0x213   :  { %931 = vmatpush3.bf16.msra.mxu1 %v930_v44 }
 0x214   :  { %907 = vmatpush3.bf16.msra.mxu0 %v906_v15 }
 0x2ca   :  { %v673_v30 = vpop.f32.mrb[2].mxu0 }
 0x2cb   :  { %v674_v32 = vpop.f32.mrb[3].mxu0 }
 0x2cc   :  { %v675_v33 = vadd.f32 %v674_v32, %v673_v30 }
 0x2ce   :  { %v420_v34 = vadd.f32 %v675_v33, %v638_v31 }
 0x2d0   :  { %948 = vtanh.f32 %v420_v34 }
 0x2da   :  { %v949_v35 = vpop.eup %948 }
 0x2db   :  { %743 = vmatmul.mubr.f32.vlgmr.msra.gmra.mrb[4].mxu0 %v949_v35 }
 0x3ae   :  { %v513_v47 = vpop.f32.mrb[4].mxu0 }
 0x3af   :  { %v514_v48 = vadd.f32 %v639_v46, %v513_v47  ;;  %v744_v49 = vpop.f32.mrb[5].mxu0 }
 0x3b1   :  { %950 = vtanh.f32 %v514_v48 }
 0x3bb   :  { %v951_v50 = vpop.eup %950 }
 0x3bc   :  { %778 = vmatmul.mubr.f32.vlgmr.msra.gmra.mrb[2].mxu1 %v951_v50 }
 0x48f   :  { %v607_v52 = vpop.f32.mrb[2].mxu1 }
 0x490   :  { %v608_v53 = vadd.f32 %v640_v51, %v607_v52  ;;  %v779_v54 = vpop.f32.mrb[3].mxu1 }
 0x492   :  { %611 = vmax.xlane.f32.xlu0 %v608_v53 }
 0x51f   :  { %v612_v45 = vpop.xlane.xlu0 %611 }
 0x520   :  { %v613_v55 = vsub.f32 %v608_v53, %v612_v45 }
 0x522   :  { %v614_v56 = vmul.f32 1.442695, %v613_v55 }
 0x524   :  { %952 = vpow2.f32 %v614_v56 }
 0x52e   :  { %v953_v57 = vpop.eup %952 }
 0x52f   :  { %616 = vadd.xlane.f32.xlu0 %v953_v57 }
 0x5bc   :  { %v617_v58 = vpop.xlane.xlu0 %616 }
 0x5bd   :  { %954 = vrcp.f32 %v617_v58 }
 0x5c7   :  { %v955_v59 = vpop.eup %954 }
 0x5c8   :  { %v619_v60 = vmul.f32 %v955_v59, %v953_v57 }
 0x5ca   :  { %620 = vst [vmem:[#allocation7] sm:$0xff] %v619_v60 }
 0x5cb   :  { %1011 = shalt.err (!%p1008_p6)
}
 0x5cc   :  { %s1012_s21 = scalar_lea.hbm %s1372_s11, 128 }
 0x5cd   :  { %p1013_p7 = scmp.ne.s32.totalorder %s1372_s11, %s1012_s21  ;;  %p1016_p8 = scmp.lt.u32.totalorder %s1012_s21, %s1372_s11 }
 0x5cf   :  { %p1018_p9 = pnand %p1016_p8, %p1013_p7 }
 0x5d1   :  { %1021 = shalt.err (!%p1018_p9)
}
 0x5d2   :  { %630 = dma.vmem_to_hbm [thread:$0]  %s628_s9, 128, %s1372_s11, [#allocation4]  }
 0x5d3   :  { %1026 = dma.done.wait [#allocation4], 128  }
 0x5d4   :  { %1027 = vsyncadd [#allocation4], 4294967168 }
 0x5d5   :  { %634 = vsyncpa [#allocation3], 1 }
 0x5d6   :  { %635 = vsyncpa [#allocation6], 1 }
 0x5d7   :  { %636 = vsyncpa [#allocation4], 1 }

</bundles_post_ra>
